<compile_context>
chip_gen: v7x
topology: tpu7x:2x2x1
jax: 0.10.0
libtpu: 0.0.40
codegen_flags: <defaults>
</compile_context>

<pallas_src>
import jax
import jax.numpy as jnp
from jax.experimental import pallas as pl
from jax.experimental.pallas import tpu as pltpu
import numpy as np


def _round_up(n, m):
    return ((n + m - 1) // m) * m


def dummynet_kernel(ws_ref, bs_ref, wh_ref, bh_ref, x_ref, out_ref):
    """Fused feature-major forward on one batch tile.

    ws_ref : (4, 4) f32 SMEM  -- shared layer weight (PyTorch (out, in) layout)
    bs_ref : (4,)   f32 SMEM  -- shared layer bias
    wh_ref : (4, 4) f32 SMEM  -- fused heads weight (rows 0,1 policy; 2 value; 3 zero pad)
    bh_ref : (4,)   f32 SMEM  -- fused heads bias   (same row layout)
    x_ref  : (4, RT, 128) f32 VMEM -- input tile, feature-major, batch on (sublane, lane)
    out_ref: (4, RT, 128) f32 VMEM -- fused output tile
    """
    # Load the 4 input-feature planes once; each is a dense (RT, 128) tile.
    xs = [x_ref[k] for k in range(4)]

    # Shared layer + ReLU: h[j] = relu(sum_k ws[j,k] * x[k] + bs[j]).
    # K = 4 -> unrolled VPU scalar*vector FMAs; no MXU push/drain.
    hs = []
    for j in range(4):
        acc = xs[0] * ws_ref[j, 0]
        for k in range(1, 4):
            acc = acc + xs[k] * ws_ref[j, k]
        hs.append(jnp.maximum(acc + bs_ref[j], 0.0))

    # Fused heads: out[o] = sum_j wh[o,j] * h[j] + bh[o].
    # Row 3 has zero weights/bias -> writes zeros into the padded output row,
    # keeping the (4, RT, 128) store fully initialized and sublane-dense.
    for o in range(4):
        acc = hs[0] * wh_ref[o, 0]
        for j in range(1, 4):
            acc = acc + hs[j] * wh_ref[o, j]
        out_ref[o] = acc + bh_ref[o]


def dummynet_forward(x, params, *, rows_per_tile=512):
    """x: (B, 4) float32. Returns (policy (B, 2), value (B, 1)).

    rows_per_tile: batch rows of 128 lanes per grid step (forced to a multiple
    of 8).  Default 512 -> ~1 MiB input + ~1 MiB output per step.
    """
    ws, bs, wp, bp, wv, bv = params
    B = x.shape[0]

    # Fuse policy + value heads into one (4, 4) weight / (4,) bias
    # (row 3 is a zero pad for sublane-aligned output).
    wh = jnp.concatenate([wp, wv, jnp.zeros((1, 4), jnp.float32)], axis=0)
    bh = jnp.concatenate([bp, bv, jnp.zeros((1,), jnp.float32)], axis=0)

    # Batch -> (rows, 128 lanes).  Rows per tile: multiple of 8 (sublane rule),
    # capped at rows_per_tile; pad total rows to a multiple of the tile.
    total_rows = _round_up(B, 128) // 128
    rt = max(8, (int(rows_per_tile) // 8) * 8)
    rt = min(rt, _round_up(total_rows, 8))
    R = _round_up(total_rows, rt)
    b_pad = R * 128

    # Feature-major padded input: (4, R, 128).  jnp.pad + contiguous reshape
    # (no zeros + dynamic-update-slice pass).
    x_t = x.astype(jnp.float32).T                       # (4, B)
    if b_pad > B:
        x_t = jnp.pad(x_t, ((0, 0), (0, b_pad - B)))
    x_t = x_t.reshape(4, R, 128)

    smem_spec = pl.BlockSpec(memory_space=pltpu.MemorySpace.SMEM)

    out_t = pl.pallas_call(
        dummynet_kernel,
        out_shape=jax.ShapeDtypeStruct((4, R, 128), jnp.float32),
        grid=(R // rt,),
        in_specs=[
            smem_spec,                                       # ws (4, 4)
            smem_spec,                                       # bs (4,)
            smem_spec,                                       # wh (4, 4)
            smem_spec,                                       # bh (4,)
            pl.BlockSpec((4, rt, 128), lambda i: (0, i, 0)),  # x tile
        ],
        out_specs=pl.BlockSpec((4, rt, 128), lambda i: (0, i, 0)),
        compiler_params=pltpu.CompilerParams(
            dimension_semantics=("parallel",),   # shard batch across TCs (v7x)
        ),
    )(ws, bs, wh, bh, x_t)

    # (4, R, 128) -> (4, b_pad): contiguous reshape; drop padding; split heads.
    out_flat = out_t.reshape(4, b_pad)[:, :B]
    policy = out_flat[:2].T          # (B, 2)
    value = out_flat[2:3].T          # (B, 1)
    return policy, value


def init_params(key):
    """Deterministic synthetic params, PyTorch nn.Linear (out, in) layout."""
    k1, k2, k3, k4, k5, k6 = jax.random.split(key, 6)
    ws = jax.random.uniform(k1, (4, 4), jnp.float32, -0.5, 0.5)
    bs = jax.random.uniform(k2, (4,), jnp.float32, -0.5, 0.5)
    wp = jax.random.uniform(k3, (2, 4), jnp.float32, -0.5, 0.5)
    bp = jax.random.uniform(k4, (2,), jnp.float32, -0.5, 0.5)
    wv = jax.random.uniform(k5, (1, 4), jnp.float32, -0.5, 0.5)
    bv = jax.random.uniform(k6, (1,), jnp.float32, -0.5, 0.5)
    return ws, bs, wp, bp, wv, bv


def reference_forward(x, params):
    """NumPy reference (PyTorch semantics: y = x @ W.T + b)."""
    ws, bs, wp, bp, wv, bv = (np.asarray(p) for p in params)
    x = np.asarray(x)
    h = np.maximum(x @ ws.T + bs, 0.0)
    return h @ wp.T + bp, h @ wv.T + bv


if __name__ == "__main__":
    key = jax.random.PRNGKey(0)
    kx, kp = jax.random.split(key)
    B = 8
    x = jax.random.normal(kx, (B, 4), jnp.float32)
    params = init_params(kp)

    policy, value = dummynet_forward(x, params)
    jax.block_until_ready((policy, value))

    ref_policy, ref_value = reference_forward(x, params)
    np.testing.assert_allclose(np.asarray(policy), ref_policy, rtol=1e-5, atol=1e-5)
    np.testing.assert_allclose(np.asarray(value), ref_value, rtol=1e-5, atol=1e-5)
    assert policy.shape == (B, 2) and value.shape == (B, 1)
    print("KERNEL_OK")
</pallas_src>

<mosaic_0001>
module attributes {stable_mosaic.version = 11 : i64} {
  func.func @dummynet_kernel(%arg0: i32, %arg1: memref<4x4xf32, #tpu.memory_space<smem>>, %arg2: memref<4xf32, #tpu.memory_space<smem>>, %arg3: memref<4x4xf32, #tpu.memory_space<smem>>, %arg4: memref<4xf32, #tpu.memory_space<smem>>, %arg5: memref<4x8x128xf32, #tpu.memory_space<vmem>>, %arg6: memref<4x8x128xf32, #tpu.memory_space<vmem>>) attributes {dimension_semantics = [#tpu.dimension_semantics<parallel>], iteration_bounds = array<i64: 1>, scalar_prefetch = 0 : i64, scratch_operands = 0 : i64, tpu.core_type = #tpu.core_type<tc>, window_params = [{transform_indices = @transform_0, window_bounds = array<i64: 4, 4>}, {transform_indices = @transform_1, window_bounds = array<i64: 4>}, {transform_indices = @transform_2, window_bounds = array<i64: 4, 4>}, {transform_indices = @transform_3, window_bounds = array<i64: 4>}, {transform_indices = @transform_4, window_bounds = array<i64: 4, 8, 128>}, {transform_indices = @transform_5, window_bounds = array<i64: 4, 8, 128>}]} {
    %c0 = arith.constant 0 : index
    %c0_0 = arith.constant 0 : index
    %c0_1 = arith.constant 0 : index
    %0 = vector.load %arg5[%c0, %c0_0, %c0_1] : memref<4x8x128xf32, #tpu.memory_space<vmem>>, vector<1x8x128xf32>
    %1 = vector.shape_cast %0 : vector<1x8x128xf32> to vector<8x128xf32>
    %c1 = arith.constant 1 : index
    %c0_2 = arith.constant 0 : index
    %c0_3 = arith.constant 0 : index
    %2 = vector.load %arg5[%c1, %c0_2, %c0_3] : memref<4x8x128xf32, #tpu.memory_space<vmem>>, vector<1x8x128xf32>
    %3 = vector.shape_cast %2 : vector<1x8x128xf32> to vector<8x128xf32>
    %c2 = arith.constant 2 : index
    %c0_4 = arith.constant 0 : index
    %c0_5 = arith.constant 0 : index
    %4 = vector.load %arg5[%c2, %c0_4, %c0_5] : memref<4x8x128xf32, #tpu.memory_space<vmem>>, vector<1x8x128xf32>
    %5 = vector.shape_cast %4 : vector<1x8x128xf32> to vector<8x128xf32>
    %c3 = arith.constant 3 : index
    %c0_6 = arith.constant 0 : index
    %c0_7 = arith.constant 0 : index
    %6 = vector.load %arg5[%c3, %c0_6, %c0_7] : memref<4x8x128xf32, #tpu.memory_space<vmem>>, vector<1x8x128xf32>
    %7 = vector.shape_cast %6 : vector<1x8x128xf32> to vector<8x128xf32>
    %c0_8 = arith.constant 0 : index
    %c0_9 = arith.constant 0 : index
    %8 = memref.load %arg1[%c0_8, %c0_9] : memref<4x4xf32, #tpu.memory_space<smem>>
    %9 = vector.broadcast %8 : f32 to vector<8x128xf32>
    %10 = arith.mulf %1, %9 : vector<8x128xf32>
    %c0_10 = arith.constant 0 : index
    %c1_11 = arith.constant 1 : index
    %11 = memref.load %arg1[%c0_10, %c1_11] : memref<4x4xf32, #tpu.memory_space<smem>>
    %12 = vector.broadcast %11 : f32 to vector<8x128xf32>
    %13 = arith.mulf %3, %12 : vector<8x128xf32>
    %14 = arith.addf %10, %13 : vector<8x128xf32>
    %c0_12 = arith.constant 0 : index
    %c2_13 = arith.constant 2 : index
    %15 = memref.load %arg1[%c0_12, %c2_13] : memref<4x4xf32, #tpu.memory_space<smem>>
    %16 = vector.broadcast %15 : f32 to vector<8x128xf32>
    %17 = arith.mulf %5, %16 : vector<8x128xf32>
    %18 = arith.addf %14, %17 : vector<8x128xf32>
    %c0_14 = arith.constant 0 : index
    %c3_15 = arith.constant 3 : index
    %19 = memref.load %arg1[%c0_14, %c3_15] : memref<4x4xf32, #tpu.memory_space<smem>>
    %20 = vector.broadcast %19 : f32 to vector<8x128xf32>
    %21 = arith.mulf %7, %20 : vector<8x128xf32>
    %22 = arith.addf %18, %21 : vector<8x128xf32>
    %c0_16 = arith.constant 0 : index
    %23 = memref.load %arg2[%c0_16] : memref<4xf32, #tpu.memory_space<smem>>
    %24 = vector.broadcast %23 : f32 to vector<8x128xf32>
    %25 = arith.addf %22, %24 : vector<8x128xf32>
    %cst = arith.constant 0.000000e+00 : f32
    %26 = vector.broadcast %cst : f32 to vector<8x128xf32>
    %27 = arith.maximumf %25, %26 : vector<8x128xf32>
    %c1_17 = arith.constant 1 : index
    %c0_18 = arith.constant 0 : index
    %28 = memref.load %arg1[%c1_17, %c0_18] : memref<4x4xf32, #tpu.memory_space<smem>>
    %29 = vector.broadcast %28 : f32 to vector<8x128xf32>
    %30 = arith.mulf %1, %29 : vector<8x128xf32>
    %c1_19 = arith.constant 1 : index
    %c1_20 = arith.constant 1 : index
    %31 = memref.load %arg1[%c1_19, %c1_20] : memref<4x4xf32, #tpu.memory_space<smem>>
    %32 = vector.broadcast %31 : f32 to vector<8x128xf32>
    %33 = arith.mulf %3, %32 : vector<8x128xf32>
    %34 = arith.addf %30, %33 : vector<8x128xf32>
    %c1_21 = arith.constant 1 : index
    %c2_22 = arith.constant 2 : index
    %35 = memref.load %arg1[%c1_21, %c2_22] : memref<4x4xf32, #tpu.memory_space<smem>>
    %36 = vector.broadcast %35 : f32 to vector<8x128xf32>
    %37 = arith.mulf %5, %36 : vector<8x128xf32>
    %38 = arith.addf %34, %37 : vector<8x128xf32>
    %c1_23 = arith.constant 1 : index
    %c3_24 = arith.constant 3 : index
    %39 = memref.load %arg1[%c1_23, %c3_24] : memref<4x4xf32, #tpu.memory_space<smem>>
    %40 = vector.broadcast %39 : f32 to vector<8x128xf32>
    %41 = arith.mulf %7, %40 : vector<8x128xf32>
    %42 = arith.addf %38, %41 : vector<8x128xf32>
    %c1_25 = arith.constant 1 : index
    %43 = memref.load %arg2[%c1_25] : memref<4xf32, #tpu.memory_space<smem>>
    %44 = vector.broadcast %43 : f32 to vector<8x128xf32>
    %45 = arith.addf %42, %44 : vector<8x128xf32>
    %cst_26 = arith.constant 0.000000e+00 : f32
    %46 = vector.broadcast %cst_26 : f32 to vector<8x128xf32>
    %47 = arith.maximumf %45, %46 : vector<8x128xf32>
    %c2_27 = arith.constant 2 : index
    %c0_28 = arith.constant 0 : index
    %48 = memref.load %arg1[%c2_27, %c0_28] : memref<4x4xf32, #tpu.memory_space<smem>>
    %49 = vector.broadcast %48 : f32 to vector<8x128xf32>
    %50 = arith.mulf %1, %49 : vector<8x128xf32>
    %c2_29 = arith.constant 2 : index
    %c1_30 = arith.constant 1 : index
    %51 = memref.load %arg1[%c2_29, %c1_30] : memref<4x4xf32, #tpu.memory_space<smem>>
    %52 = vector.broadcast %51 : f32 to vector<8x128xf32>
    %53 = arith.mulf %3, %52 : vector<8x128xf32>
    %54 = arith.addf %50, %53 : vector<8x128xf32>
    %c2_31 = arith.constant 2 : index
    %c2_32 = arith.constant 2 : index
    %55 = memref.load %arg1[%c2_31, %c2_32] : memref<4x4xf32, #tpu.memory_space<smem>>
    %56 = vector.broadcast %55 : f32 to vector<8x128xf32>
    %57 = arith.mulf %5, %56 : vector<8x128xf32>
    %58 = arith.addf %54, %57 : vector<8x128xf32>
    %c2_33 = arith.constant 2 : index
    %c3_34 = arith.constant 3 : index
    %59 = memref.load %arg1[%c2_33, %c3_34] : memref<4x4xf32, #tpu.memory_space<smem>>
    %60 = vector.broadcast %59 : f32 to vector<8x128xf32>
    %61 = arith.mulf %7, %60 : vector<8x128xf32>
    %62 = arith.addf %58, %61 : vector<8x128xf32>
    %c2_35 = arith.constant 2 : index
    %63 = memref.load %arg2[%c2_35] : memref<4xf32, #tpu.memory_space<smem>>
    %64 = vector.broadcast %63 : f32 to vector<8x128xf32>
    %65 = arith.addf %62, %64 : vector<8x128xf32>
    %cst_36 = arith.constant 0.000000e+00 : f32
    %66 = vector.broadcast %cst_36 : f32 to vector<8x128xf32>
    %67 = arith.maximumf %65, %66 : vector<8x128xf32>
    %c3_37 = arith.constant 3 : index
    %c0_38 = arith.constant 0 : index
    %68 = memref.load %arg1[%c3_37, %c0_38] : memref<4x4xf32, #tpu.memory_space<smem>>
    %69 = vector.broadcast %68 : f32 to vector<8x128xf32>
    %70 = arith.mulf %1, %69 : vector<8x128xf32>
    %c3_39 = arith.constant 3 : index
    %c1_40 = arith.constant 1 : index
    %71 = memref.load %arg1[%c3_39, %c1_40] : memref<4x4xf32, #tpu.memory_space<smem>>
    %72 = vector.broadcast %71 : f32 to vector<8x128xf32>
    %73 = arith.mulf %3, %72 : vector<8x128xf32>
    %74 = arith.addf %70, %73 : vector<8x128xf32>
    %c3_41 = arith.constant 3 : index
    %c2_42 = arith.constant 2 : index
    %75 = memref.load %arg1[%c3_41, %c2_42] : memref<4x4xf32, #tpu.memory_space<smem>>
    %76 = vector.broadcast %75 : f32 to vector<8x128xf32>
    %77 = arith.mulf %5, %76 : vector<8x128xf32>
    %78 = arith.addf %74, %77 : vector<8x128xf32>
    %c3_43 = arith.constant 3 : index
    %c3_44 = arith.constant 3 : index
    %79 = memref.load %arg1[%c3_43, %c3_44] : memref<4x4xf32, #tpu.memory_space<smem>>
    %80 = vector.broadcast %79 : f32 to vector<8x128xf32>
    %81 = arith.mulf %7, %80 : vector<8x128xf32>
    %82 = arith.addf %78, %81 : vector<8x128xf32>
    %c3_45 = arith.constant 3 : index
    %83 = memref.load %arg2[%c3_45] : memref<4xf32, #tpu.memory_space<smem>>
    %84 = vector.broadcast %83 : f32 to vector<8x128xf32>
    %85 = arith.addf %82, %84 : vector<8x128xf32>
    %cst_46 = arith.constant 0.000000e+00 : f32
    %86 = vector.broadcast %cst_46 : f32 to vector<8x128xf32>
    %87 = arith.maximumf %85, %86 : vector<8x128xf32>
    %c0_47 = arith.constant 0 : index
    %c0_48 = arith.constant 0 : index
    %88 = memref.load %arg3[%c0_47, %c0_48] : memref<4x4xf32, #tpu.memory_space<smem>>
    %89 = vector.broadcast %88 : f32 to vector<8x128xf32>
    %90 = arith.mulf %27, %89 : vector<8x128xf32>
    %c0_49 = arith.constant 0 : index
    %c1_50 = arith.constant 1 : index
    %91 = memref.load %arg3[%c0_49, %c1_50] : memref<4x4xf32, #tpu.memory_space<smem>>
    %92 = vector.broadcast %91 : f32 to vector<8x128xf32>
    %93 = arith.mulf %47, %92 : vector<8x128xf32>
    %94 = arith.addf %90, %93 : vector<8x128xf32>
    %c0_51 = arith.constant 0 : index
    %c2_52 = arith.constant 2 : index
    %95 = memref.load %arg3[%c0_51, %c2_52] : memref<4x4xf32, #tpu.memory_space<smem>>
    %96 = vector.broadcast %95 : f32 to vector<8x128xf32>
    %97 = arith.mulf %67, %96 : vector<8x128xf32>
    %98 = arith.addf %94, %97 : vector<8x128xf32>
    %c0_53 = arith.constant 0 : index
    %c3_54 = arith.constant 3 : index
    %99 = memref.load %arg3[%c0_53, %c3_54] : memref<4x4xf32, #tpu.memory_space<smem>>
    %100 = vector.broadcast %99 : f32 to vector<8x128xf32>
    %101 = arith.mulf %87, %100 : vector<8x128xf32>
    %102 = arith.addf %98, %101 : vector<8x128xf32>
    %c0_55 = arith.constant 0 : index
    %103 = memref.load %arg4[%c0_55] : memref<4xf32, #tpu.memory_space<smem>>
    %104 = vector.broadcast %103 : f32 to vector<8x128xf32>
    %105 = arith.addf %102, %104 : vector<8x128xf32>
    %c0_56 = arith.constant 0 : index
    %c0_57 = arith.constant 0 : index
    %c0_58 = arith.constant 0 : index
    %106 = vector.load %arg6[%c0_56, %c0_57, %c0_58] : memref<4x8x128xf32, #tpu.memory_space<vmem>>, vector<1x8x128xf32>
    %107 = vector.shape_cast %106 : vector<1x8x128xf32> to vector<8x128xf32>
    %108 = vector.shape_cast %105 : vector<8x128xf32> to vector<1x8x128xf32>
    tpu.vector_store %arg6[%c0_56, %c0_57, %c0_58], %108 {strides = array<i32>} : memref<4x8x128xf32, #tpu.memory_space<vmem>>, vector<1x8x128xf32>,
    %c1_59 = arith.constant 1 : index
    %c0_60 = arith.constant 0 : index
    %109 = memref.load %arg3[%c1_59, %c0_60] : memref<4x4xf32, #tpu.memory_space<smem>>
    %110 = vector.broadcast %109 : f32 to vector<8x128xf32>
    %111 = arith.mulf %27, %110 : vector<8x128xf32>
    %c1_61 = arith.constant 1 : index
    %c1_62 = arith.constant 1 : index
    %112 = memref.load %arg3[%c1_61, %c1_62] : memref<4x4xf32, #tpu.memory_space<smem>>
    %113 = vector.broadcast %112 : f32 to vector<8x128xf32>
    %114 = arith.mulf %47, %113 : vector<8x128xf32>
    %115 = arith.addf %111, %114 : vector<8x128xf32>
    %c1_63 = arith.constant 1 : index
    %c2_64 = arith.constant 2 : index
    %116 = memref.load %arg3[%c1_63, %c2_64] : memref<4x4xf32, #tpu.memory_space<smem>>
    %117 = vector.broadcast %116 : f32 to vector<8x128xf32>
    %118 = arith.mulf %67, %117 : vector<8x128xf32>
    %119 = arith.addf %115, %118 : vector<8x128xf32>
    %c1_65 = arith.constant 1 : index
    %c3_66 = arith.constant 3 : index
    %120 = memref.load %arg3[%c1_65, %c3_66] : memref<4x4xf32, #tpu.memory_space<smem>>
    %121 = vector.broadcast %120 : f32 to vector<8x128xf32>
    %122 = arith.mulf %87, %121 : vector<8x128xf32>
    %123 = arith.addf %119, %122 : vector<8x128xf32>
    %c1_67 = arith.constant 1 : index
    %124 = memref.load %arg4[%c1_67] : memref<4xf32, #tpu.memory_space<smem>>
    %125 = vector.broadcast %124 : f32 to vector<8x128xf32>
    %126 = arith.addf %123, %125 : vector<8x128xf32>
    %c1_68 = arith.constant 1 : index
    %c0_69 = arith.constant 0 : index
    %c0_70 = arith.constant 0 : index
    %127 = vector.load %arg6[%c1_68, %c0_69, %c0_70] : memref<4x8x128xf32, #tpu.memory_space<vmem>>, vector<1x8x128xf32>
    %128 = vector.shape_cast %127 : vector<1x8x128xf32> to vector<8x128xf32>
    %129 = vector.shape_cast %126 : vector<8x128xf32> to vector<1x8x128xf32>
    tpu.vector_store %arg6[%c1_68, %c0_69, %c0_70], %129 {strides = array<i32>} : memref<4x8x128xf32, #tpu.memory_space<vmem>>, vector<1x8x128xf32>,
    %c2_71 = arith.constant 2 : index
    %c0_72 = arith.constant 0 : index
    %130 = memref.load %arg3[%c2_71, %c0_72] : memref<4x4xf32, #tpu.memory_space<smem>>
    %131 = vector.broadcast %130 : f32 to vector<8x128xf32>
    %132 = arith.mulf %27, %131 : vector<8x128xf32>
    %c2_73 = arith.constant 2 : index
    %c1_74 = arith.constant 1 : index
    %133 = memref.load %arg3[%c2_73, %c1_74] : memref<4x4xf32, #tpu.memory_space<smem>>
    %134 = vector.broadcast %133 : f32 to vector<8x128xf32>
    %135 = arith.mulf %47, %134 : vector<8x128xf32>
    %136 = arith.addf %132, %135 : vector<8x128xf32>
    %c2_75 = arith.constant 2 : index
    %c2_76 = arith.constant 2 : index
    %137 = memref.load %arg3[%c2_75, %c2_76] : memref<4x4xf32, #tpu.memory_space<smem>>
    %138 = vector.broadcast %137 : f32 to vector<8x128xf32>
    %139 = arith.mulf %67, %138 : vector<8x128xf32>
    %140 = arith.addf %136, %139 : vector<8x128xf32>
    %c2_77 = arith.constant 2 : index
    %c3_78 = arith.constant 3 : index
    %141 = memref.load %arg3[%c2_77, %c3_78] : memref<4x4xf32, #tpu.memory_space<smem>>
    %142 = vector.broadcast %141 : f32 to vector<8x128xf32>
    %143 = arith.mulf %87, %142 : vector<8x128xf32>
    %144 = arith.addf %140, %143 : vector<8x128xf32>
    %c2_79 = arith.constant 2 : index
    %145 = memref.load %arg4[%c2_79] : memref<4xf32, #tpu.memory_space<smem>>
    %146 = vector.broadcast %145 : f32 to vector<8x128xf32>
    %147 = arith.addf %144, %146 : vector<8x128xf32>
    %c2_80 = arith.constant 2 : index
    %c0_81 = arith.constant 0 : index
    %c0_82 = arith.constant 0 : index
    %148 = vector.load %arg6[%c2_80, %c0_81, %c0_82] : memref<4x8x128xf32, #tpu.memory_space<vmem>>, vector<1x8x128xf32>
    %149 = vector.shape_cast %148 : vector<1x8x128xf32> to vector<8x128xf32>
    %150 = vector.shape_cast %147 : vector<8x128xf32> to vector<1x8x128xf32>
    tpu.vector_store %arg6[%c2_80, %c0_81, %c0_82], %150 {strides = array<i32>} : memref<4x8x128xf32, #tpu.memory_space<vmem>>, vector<1x8x128xf32>,
    %c3_83 = arith.constant 3 : index
    %c0_84 = arith.constant 0 : index
    %151 = memref.load %arg3[%c3_83, %c0_84] : memref<4x4xf32, #tpu.memory_space<smem>>
    %152 = vector.broadcast %151 : f32 to vector<8x128xf32>
    %153 = arith.mulf %27, %152 : vector<8x128xf32>
    %c3_85 = arith.constant 3 : index
    %c1_86 = arith.constant 1 : index
    %154 = memref.load %arg3[%c3_85, %c1_86] : memref<4x4xf32, #tpu.memory_space<smem>>
    %155 = vector.broadcast %154 : f32 to vector<8x128xf32>
    %156 = arith.mulf %47, %155 : vector<8x128xf32>
    %157 = arith.addf %153, %156 : vector<8x128xf32>
    %c3_87 = arith.constant 3 : index
    %c2_88 = arith.constant 2 : index
    %158 = memref.load %arg3[%c3_87, %c2_88] : memref<4x4xf32, #tpu.memory_space<smem>>
    %159 = vector.broadcast %158 : f32 to vector<8x128xf32>
    %160 = arith.mulf %67, %159 : vector<8x128xf32>
    %161 = arith.addf %157, %160 : vector<8x128xf32>
    %c3_89 = arith.constant 3 : index
    %c3_90 = arith.constant 3 : index
    %162 = memref.load %arg3[%c3_89, %c3_90] : memref<4x4xf32, #tpu.memory_space<smem>>
    %163 = vector.broadcast %162 : f32 to vector<8x128xf32>
    %164 = arith.mulf %87, %163 : vector<8x128xf32>
    %165 = arith.addf %161, %164 : vector<8x128xf32>
    %c3_91 = arith.constant 3 : index
    %166 = memref.load %arg4[%c3_91] : memref<4xf32, #tpu.memory_space<smem>>
    %167 = vector.broadcast %166 : f32 to vector<8x128xf32>
    %168 = arith.addf %165, %167 : vector<8x128xf32>
    %c3_92 = arith.constant 3 : index
    %c0_93 = arith.constant 0 : index
    %c0_94 = arith.constant 0 : index
    %169 = vector.load %arg6[%c3_92, %c0_93, %c0_94] : memref<4x8x128xf32, #tpu.memory_space<vmem>>, vector<1x8x128xf32>
    %170 = vector.shape_cast %169 : vector<1x8x128xf32> to vector<8x128xf32>
    %171 = vector.shape_cast %168 : vector<8x128xf32> to vector<1x8x128xf32>
    tpu.vector_store %arg6[%c3_92, %c0_93, %c0_94], %171 {strides = array<i32>} : memref<4x8x128xf32, #tpu.memory_space<vmem>>, vector<1x8x128xf32>,
    return
  }
  func.func @transform_0(%arg0: i32) -> (i32, i32) {
    %c0_i32 = arith.constant 0 : i32
    %c0_i32_0 = arith.constant 0 : i32
    %c0_i32_1 = arith.constant 0 : i32
    return %c0_i32, %c0_i32_0 : i32, i32
  }
  func.func @transform_1(%arg0: i32) -> i32 {
    %c0_i32 = arith.constant 0 : i32
    %c0_i32_0 = arith.constant 0 : i32
    return %c0_i32 : i32
  }
  func.func @transform_2(%arg0: i32) -> (i32, i32) {
    %c0_i32 = arith.constant 0 : i32
    %c0_i32_0 = arith.constant 0 : i32
    %c0_i32_1 = arith.constant 0 : i32
    return %c0_i32, %c0_i32_0 : i32, i32
  }
  func.func @transform_3(%arg0: i32) -> i32 {
    %c0_i32 = arith.constant 0 : i32
    %c0_i32_0 = arith.constant 0 : i32
    return %c0_i32 : i32
  }
  func.func @transform_4(%arg0: i32) -> (i32, i32, i32) {
    %c0_i32 = arith.constant 0 : i32
    %c0_i32_0 = arith.constant 0 : i32
    %c0_i32_1 = arith.constant 0 : i32
    return %c0_i32, %arg0, %c0_i32_0 : i32, i32, i32
  }
  func.func @transform_5(%arg0: i32) -> (i32, i32, i32) {
    %c0_i32 = arith.constant 0 : i32
    %c0_i32_0 = arith.constant 0 : i32
    %c0_i32_1 = arith.constant 0 : i32
    return %c0_i32, %arg0, %c0_i32_0 : i32, i32, i32
  }
}

</mosaic_0001>

<bundles_post_ra>
// kernel: tpu_custom_call.1
= control target key start
LH: loop header
LB: loop body
LE: loop exit
PB: predicated region body
PF: predicated region fallthrough
CT: control target
= control target key end

     0   :  { %10 = vsyncpa [#allocation5], 0  ;;  %s622_s0 = inlined_call_operand.hbm [shape: f32[4,4], index: 0, kind: input, shape index: {}]   ;;  %s623_s1 = inlined_call_operand.vmem [shape: f32[4], index: 1, kind: input, shape index: {}]   ;;  %s624_s2 = inlined_call_operand.vmem [shape: f32[4,4], index: 2, kind: input, shape index: {}]   ;;  %s625_s3 = inlined_call_operand.vmem [shape: f32[4], index: 3, kind: input, shape index: {}]   ;;  %s626_s4 = inlined_call_operand.hbm [shape: f32[4,8,128], index: 4, kind: input, shape index: {}]   ;;  %s627_s5 = inlined_call_operand.hbm [shape: f32[4,8,128], index: 5, kind: output, shape index: {}]  }
   0x1   :  { %11 = vsyncpa [#allocation6], 0 }
   0x2   :  { %12 = vsyncpa [#allocation9], 0 }
   0x3   :  { %13 = vsyncpa [#allocation3], 0  ;;  %s39_s20 = sshll.u32 %s624_s2, 4  ;;  %s40_s20 = int_to_ptr.vmem [resolvable:$true] %s39_s20 }
   0x4   :  { %14 = vsyncpa [#allocation4], 0  ;;  %s307_s21 = scalar_lea.vmem %s40_s20, 64  ;;  %p312_p1 = scmp.lt.s32.totalorder %s40_s20, %s40_s20 }
   0x5   :  { %p308_p0 = scmp.ne.s32.totalorder %s40_s20, %s307_s21  ;;  %p313_p2 = scmp.lt.s32.totalorder %s307_s21, %s307_s21 }
   0x7   :  { %p314_p3 = por %p313_p2, %p312_p1 }
   0x9   :  { %p315_p4 = pnand %p314_p3, %p308_p0 }
   0xb   :  { %318 = shalt.err (!%p315_p4)
}
   0xc   :  { %s407_s22 = smov [#allocation8]   ;;  %s319_s25 = scalar_lea.hbm %s622_s0, 64 }
   0xd   :  { %42 = dma.vmem_to_smem %s40_s20, 64, %s407_s22, [#allocation9]  }
   0xe   :  { %p320_p5 = scmp.ne.s32.totalorder %s622_s0, %s319_s25  ;;  %p323_p6 = scmp.lt.u32.totalorder %s319_s25, %s622_s0 }
  0x10   :  { %p325_p7 = pnand %p323_p6, %p320_p5 }
  0x12   :  { %328 = shalt.err (!%p325_p7)
}
  0x13   :  { %s408_s29 = smov [#allocation2]   ;;  %s29_s9 = sshll.u32 %s623_s1, 4  ;;  %s30_s9 = int_to_ptr.vmem [resolvable:$true] %s29_s9 }
  0x14   :  { %22 = dma.hbm_to_smem %s622_s0, 64, %s408_s29, [#allocation5]  }
  0x15   :  { %s49_s12 = sshll.u32 %s625_s3, 4  ;;  %s329_s13 = scalar_lea.vmem %s30_s9, 16  ;;  %s50_s12 = int_to_ptr.vmem [resolvable:$true] %s49_s12 }
  0x16   :  { %p330_p8 = scmp.ne.s32.totalorder %s30_s9, %s329_s13  ;;  %p334_p9 = scmp.lt.s32.totalorder %s30_s9, %s30_s9 }
  0x17   :  { %p335_p10 = scmp.lt.s32.totalorder %s329_s13, %s329_s13 }
  0x19   :  { %p336_p11 = por %p335_p10, %p334_p9 }
  0x1b   :  { %p337_p12 = pnand %p336_p11, %p330_p8 }
  0x1d   :  { %340 = shalt.err (!%p337_p12)
}
  0x1e   :  { %s409_s14 = smov [#allocation7]   ;;  %s341_s0 = scalar_lea.vmem %s50_s12, 16 }
  0x1f   :  { %32 = dma.vmem_to_smem %s30_s9, 16, %s409_s14, [#allocation6]  }
  0x20   :  { %p342_p13 = scmp.ne.s32.totalorder %s50_s12, %s341_s0  ;;  %p346_p0 = scmp.lt.s32.totalorder %s50_s12, %s50_s12 }
  0x21   :  { %p347_p1 = scmp.lt.s32.totalorder %s341_s0, %s341_s0 }
  0x23   :  { %p348_p2 = por %p347_p1, %p346_p0 }
  0x25   :  { %p349_p3 = pnand %p348_p2, %p342_p13 }
  0x27   :  { %352 = shalt.err (!%p349_p3)
}
  0x28   :  { %s410_s1 = smov [#allocation10]   ;;  %s411_s3 = smov [#allocation11]  }
  0x29   :  { %52 = dma.vmem_to_smem %s50_s12, 16, %s410_s1, [#allocation9]  }
  0x2a   :  { %s58_s15 = sshll.u32 %s411_s3, 4  ;;  %s353_s18 = scalar_lea.hbm %s626_s4, 512  ;;  %s59_s15 = int_to_ptr.vmem [resolvable:$true] %s58_s15 }
  0x2b   :  { %p354_p4 = scmp.ne.s32.totalorder %s626_s4, %s353_s18  ;;  %p357_p5 = scmp.lt.u32.totalorder %s353_s18, %s626_s4 }
  0x2d   :  { %p359_p6 = pnand %p357_p5, %p354_p4 }
  0x2f   :  { %362 = shalt.err (!%p359_p6)
}
  0x30   :  { %s363_s23 = scalar_lea.vmem %s59_s15, 512  ;;  %p368_p8 = scmp.lt.s32.totalorder %s59_s15, %s59_s15 }
  0x31   :  { %p364_p7 = scmp.ne.s32.totalorder %s59_s15, %s363_s23  ;;  %p369_p9 = scmp.lt.s32.totalorder %s363_s23, %s363_s23 }
  0x33   :  { %p370_p10 = por %p369_p9, %p368_p8 }
  0x35   :  { %p371_p11 = pnand %p370_p10, %p364_p7 }
  0x37   :  { %374 = shalt.err (!%p371_p11)
}
  0x38   :  { %s412_s24 = smov 128   ;;  %s413_s25 = smov 8  }
  0x39   :  { %64 = dma.hbm_to_vmem [thread:$0]  %s626_s4, 512, %s59_s15, [#allocation3], %s412_s24, %s412_s24, %s413_s25  }
  0x3a   :  { %397 = dma.done.wait [#allocation5], 64  }
  0x3b   :  { %398 = vsyncadd [#allocation5], 4294967232 }
  0x3c   :  { %399 = dma.done.wait [#allocation6], 16  }
  0x3d   :  { %400 = vsyncadd [#allocation6], 4294967280 }
  0x3e   :  { %401 = dma.done.wait [#allocation9], 80  }
  0x3f   :  { %402 = vsyncadd [#allocation9], 4294967216 }
  0x40   :  { %403 = dma.done.wait [#allocation3], 512  }
  0x41   :  { %404 = vsyncadd [#allocation3], 4294966784 }
  0x42   :  { %80 = sfence }
  0x43   :  { %s88_s2 = sld [smem:[#allocation2]]  ;;  %s263_s28 = sld [smem:[#allocation2 + $0x1]]  ;;  %v483_v0 = vld [vmem:[#allocation11] sm:$0xff]  ;;  %v489_v1 = vld [vmem:[#allocation11 + $0x8] sm:$0xff]  ;;  %v491_v2 = vld [vmem:[#allocation11 + $0x10] sm:$0xff] }
  0x44   :  { %s264_s29 = sld [smem:[#allocation2 + $0x2]]  ;;  %s265_s30 = sld [smem:[#allocation2 + $0x3]]  ;;  %v497_v3 = vld [vmem:[#allocation11 + $0x18] sm:$0xff] }
  0x45   :  { %s481_s6 = sld [smem:[#allocation7]]  ;;  %s267_s8 = sld [smem:[#allocation2 + $0x81]] }
  0x46   :  { %s266_s7 = sld [smem:[#allocation2 + $0x80]]  ;;  %s485_s4 = sld [smem:[#allocation2 + $0x82]] }
  0x47   :  { %s487_s9 = sld [smem:[#allocation2 + $0x83]]  ;;  %s493_s10 = sld [smem:[#allocation7 + $0x1]] }
  0x48   :  { %s495_s11 = sld [smem:[#allocation2 + $0x100]]  ;;  %s499_s12 = sld [smem:[#allocation2 + $0x101]] }
  0x49   :  { %v89_v4 = vstv %s88_s2  ;;  %s501_s13 = sld [smem:[#allocation2 + $0x102]]  ;;  %v92_v6 = vstv %s263_s28  ;;  %s504_s14 = sld [smem:[#allocation2 + $0x103]] }
  0x4a   :  { %v90_v5 = vmul.f32 %v89_v4, %v483_v0  ;;  %v96_v7 = vstv %s264_s29  ;;  %s506_s0 = sld [smem:[#allocation7 + $0x2]]  ;;  %v93_v8 = vmul.f32 %v92_v6, %v489_v1  ;;  %v100_v10 = vstv %s265_s30  ;;  %s510_s1 = sld [smem:[#allocation2 + $0x180]] }
  0x4b   :  { %v97_v9 = vmul.f32 %v96_v7, %v491_v2  ;;  %s512_s3 = sld [smem:[#allocation2 + $0x181]]  ;;  %v101_v11 = vmul.f32 %v100_v10, %v497_v3  ;;  %v111_v13 = vstv %s267_s8  ;;  %s515_s15 = sld [smem:[#allocation2 + $0x182]]  ;;  %v104_v18 = vstv %s481_s6 }
  0x4c   :  { %v108_v12 = vstv %s266_s7  ;;  %s517_s16 = sld [smem:[#allocation2 + $0x183]]  ;;  %v94_v14 = vadd.f32 %v93_v8, %v90_v5  ;;  %v112_v16 = vmul.f32 %v111_v13, %v489_v1  ;;  %v115_v17 = vstv %s485_s4  ;;  %s528_s18 = sld [smem:[#allocation8]] }
  0x4d   :  { %v109_v15 = vmul.f32 %v108_v12, %v483_v0  ;;  %s522_s17 = sld [smem:[#allocation7 + $0x3]]  ;;  %v116_v19 = vmul.f32 %v115_v17, %v491_v2  ;;  %v119_v20 = vstv %s487_s9  ;;  %s530_s19 = sld [smem:[#allocation8 + $0x1]]  ;;  %v123_v26 = vstv %s493_s10 }
  0x4e   :  { %v127_v21 = vstv %s495_s11  ;;  %v98_v22 = vadd.f32 %v97_v9, %v94_v14  ;;  %v120_v24 = vmul.f32 %v119_v20, %v497_v3  ;;  %s534_s20 = sld [smem:[#allocation8 + $0x2]]  ;;  %s536_s21 = sld [smem:[#allocation8 + $0x3]]  ;;  %v130_v27 = vstv %s499_s12 }
  0x4f   :  { %v113_v23 = vadd.f32 %v112_v16, %v109_v15  ;;  %v128_v25 = vmul.f32 %v127_v21, %v483_v0  ;;  %v134_v28 = vstv %s501_s13  ;;  %v138_v29 = vstv %s504_s14  ;;  %s542_s22 = sld [smem:[#allocation8 + $0x80]]  ;;  %s544_s23 = sld [smem:[#allocation8 + $0x81]] }
  0x50   :  { %v102_v30 = vadd.f32 %v101_v11, %v98_v22  ;;  %v131_v32 = vmul.f32 %v130_v27, %v489_v1  ;;  %v135_v33 = vmul.f32 %v134_v28, %v491_v2  ;;  %s548_s26 = sld [smem:[#allocation10]]  ;;  %v139_v34 = vmul.f32 %v138_v29, %v497_v3  ;;  %s554_s27 = sld [smem:[#allocation8 + $0x82]] }
  0x51   :  { %v117_v31 = vadd.f32 %v116_v19, %v113_v23  ;;  %v146_v35 = vstv %s510_s1  ;;  %v149_v36 = vstv %s512_s3  ;;  %v153_v37 = vstv %s515_s15  ;;  %s556_s2 = sld [smem:[#allocation8 + $0x83]]  ;;  %s559_s28 = sld [smem:[#allocation8 + $0x100]] }
  0x52   :  { %v105_v38 = vadd.f32 %v104_v18, %v102_v30  ;;  %v132_v40 = vadd.f32 %v131_v32, %v128_v25  ;;  %v147_v41 = vmul.f32 %v146_v35, %v483_v0  ;;  %v142_v42 = vstv %s506_s0  ;;  %s565_s29 = sld [smem:[#allocation8 + $0x101]]  ;;  %s567_s30 = sld [smem:[#allocation8 + $0x102]] }
  0x53   :  { %v121_v39 = vadd.f32 %v120_v24, %v117_v31  ;;  %v150_v43 = vmul.f32 %v149_v36, %v489_v1  ;;  %v154_v44 = vmul.f32 %v153_v37, %v491_v2  ;;  %v157_v45 = vstv %s517_s16  ;;  %s570_s6 = sld [smem:[#allocation10 + $0x1]]  ;;  %s575_s7 = sld [smem:[#allocation8 + $0x103]] }
  0x54   :  { %v106_v46 = vmax.f32 %v105_v38, 0.0  ;;  %v136_v48 = vadd.f32 %v135_v33, %v132_v40  ;;  %v161_v49 = vstv %s522_s17  ;;  %v158_v51 = vmul.f32 %v157_v45, %v497_v3  ;;  %s577_s8 = sld [smem:[#allocation8 + $0x180]]  ;;  %s583_s4 = sld [smem:[#allocation8 + $0x181]] }
  0x55   :  { %v124_v47 = vadd.f32 %v123_v26, %v121_v39  ;;  %v151_v50 = vadd.f32 %v150_v43, %v147_v41  ;;  %v165_v52 = vstv %s528_s18  ;;  %v168_v53 = vstv %s530_s19  ;;  %s585_s9 = sld [smem:[#allocation8 + $0x182]]  ;;  %s587_s10 = sld [smem:[#allocation8 + $0x183]] }
  0x56   :  { %v140_v55 = vadd.f32 %v139_v34, %v136_v48  ;;  %v166_v56 = vmul.f32 %v165_v52, %v106_v46  ;;  %v172_v57 = vstv %s534_s20  ;;  %v176_v59 = vstv %s536_s21  ;;  %s592_s11 = sld [smem:[#allocation10 + $0x2]]  ;;  %s600_s12 = sld [smem:[#allocation10 + $0x3]] }
  0x57   :  { %v125_v54 = vmax.f32 %v124_v47, 0.0  ;;  %v155_v58 = vadd.f32 %v154_v44, %v151_v50  ;;  %v184_v60 = vstv %s542_s22  ;;  %v187_v61 = vstv %s544_s23  ;;  %s414_s13 = smov [#allocation12]  }
  0x58   :  { %v143_v62 = vadd.f32 %v142_v42, %v140_v55  ;;  %v185_v0 = vmul.f32 %v184_v60, %v106_v46  ;;  %v180_v3 = vstv %s548_s26  ;;  %v191_v4 = vstv %s554_s27  ;;  %s248_s14 = sshll.u32 %s414_s13, 4  ;;  %s249_s14 = int_to_ptr.vmem [resolvable:$true] %s248_s14 }
  0x59   :  { %v169_v63 = vmul.f32 %v168_v53, %v125_v54  ;;  %v188_v1 = vmul.f32 %v187_v61, %v125_v54  ;;  %v159_v2 = vadd.f32 %v158_v51, %v155_v58  ;;  %v195_v5 = vstv %s556_s2  ;;  %s375_s0 = scalar_lea.vmem %s249_s14, 512  ;;  %p380_p13 = scmp.lt.s32.totalorder %s249_s14, %s249_s14 }
  0x5a   :  { %v144_v6 = vmax.f32 %v143_v62, 0.0  ;;  %v204_v9 = vstv %s559_s28  ;;  %v207_v12 = vstv %s565_s29  ;;  %v211_v13 = vstv %s567_s30  ;;  %p376_p12 = scmp.ne.s32.totalorder %s249_s14, %s375_s0  ;;  %p381_p0 = scmp.lt.s32.totalorder %s375_s0, %s375_s0 }
  0x5b   :  { %v170_v7 = vadd.f32 %v169_v63, %v166_v56  ;;  %v189_v8 = vadd.f32 %v188_v1, %v185_v0  ;;  %v162_v10 = vadd.f32 %v161_v49, %v159_v2  ;;  %v205_v11 = vmul.f32 %v204_v9, %v106_v46 }
  0x5c   :  { %v173_v14 = vmul.f32 %v172_v57, %v144_v6  ;;  %v192_v15 = vmul.f32 %v191_v4, %v144_v6  ;;  %v208_v16 = vmul.f32 %v207_v12, %v125_v54  ;;  %v212_v17 = vmul.f32 %v211_v13, %v144_v6  ;;  %p382_p1 = por %p381_p0, %p380_p13 }
  0x5d   :  { %v163_v18 = vmax.f32 %v162_v10, 0.0  ;;  %v199_v19 = vstv %s570_s6  ;;  %v215_v20 = vstv %s575_s7  ;;  %v224_v21 = vstv %s577_s8 }
  0x5e   :  { %v174_v22 = vadd.f32 %v173_v14, %v170_v7  ;;  %v193_v23 = vadd.f32 %v192_v15, %v189_v8  ;;  %v209_v24 = vadd.f32 %v208_v16, %v205_v11  ;;  %v225_v25 = vmul.f32 %v224_v21, %v106_v46  ;;  %p383_p2 = pnand %p382_p1, %p376_p12 }
  0x5f   :  { %v177_v26 = vmul.f32 %v176_v59, %v163_v18  ;;  %v196_v27 = vmul.f32 %v195_v5, %v163_v18  ;;  %v216_v28 = vmul.f32 %v215_v20, %v163_v18  ;;  %v227_v29 = vstv %s583_s4 }
  0x60   :  { %v213_v30 = vadd.f32 %v212_v17, %v209_v24  ;;  %v228_v31 = vmul.f32 %v227_v29, %v125_v54  ;;  %v231_v32 = vstv %s585_s9  ;;  %v235_v33 = vstv %s587_s10 }
  0x61   :  { %v178_v34 = vadd.f32 %v177_v26, %v174_v22  ;;  %v197_v35 = vadd.f32 %v196_v27, %v193_v23  ;;  %v219_v36 = vstv %s592_s11  ;;  %v232_v37 = vmul.f32 %v231_v32, %v144_v6 }
  0x62   :  { %v217_v38 = vadd.f32 %v216_v28, %v213_v30  ;;  %v229_v39 = vadd.f32 %v228_v31, %v225_v25  ;;  %v236_v40 = vmul.f32 %v235_v33, %v163_v18  ;;  %v239_v45 = vstv %s600_s12 }
  0x63   :  { %v181_v41 = vadd.f32 %v180_v3, %v178_v34  ;;  %v200_v42 = vadd.f32 %v199_v19, %v197_v35 }
  0x64   :  { %v220_v43 = vadd.f32 %v219_v36, %v217_v38  ;;  %v233_v44 = vadd.f32 %v232_v37, %v229_v39 }
  0x65   :  { %182 = vst [vmem:[#allocation12] sm:$0xff] %v181_v41  ;;  %202 = vst [vmem:[#allocation12 + $0x8] sm:$0xff] %v200_v42 }
  0x66   :  { %222 = vst [vmem:[#allocation12 + $0x10] sm:$0xff] %v220_v43  ;;  %v237_v46 = vadd.f32 %v236_v40, %v233_v44 }
  0x68   :  { %v240_v47 = vadd.f32 %v239_v45, %v237_v46 }
  0x6a   :  { %242 = vst [vmem:[#allocation12 + $0x18] sm:$0xff] %v240_v47 }
  0x6b   :  { %386 = shalt.err (!%p383_p2)
}
  0x6c   :  { %s387_s15 = scalar_lea.hbm %s627_s5, 512 }
  0x6d   :  { %p388_p3 = scmp.ne.s32.totalorder %s627_s5, %s387_s15  ;;  %p391_p4 = scmp.lt.u32.totalorder %s387_s15, %s627_s5 }
  0x6f   :  { %p393_p5 = pnand %p391_p4, %p388_p3 }
  0x71   :  { %396 = shalt.err (!%p393_p5)
}
  0x72   :  { %254 = dma.vmem_to_hbm [thread:$0]  %s249_s14, 512, %s627_s5, [#allocation4], %s412_s24, %s412_s24, %s413_s25  }
  0x73   :  { %405 = dma.done.wait [#allocation4], 512  }
  0x74   :  { %406 = vsyncadd [#allocation4], 4294966784 }
  0x75   :  { %258 = vsyncpa [#allocation3], 1 }
  0x76   :  { %259 = vsyncpa [#allocation4], 1 }
  0x77   :  { %260 = vsyncpa [#allocation5], 1 }
  0x78   :  { %261 = vsyncpa [#allocation6], 1 }
  0x79   :  { %262 = vsyncpa [#allocation9], 1 }

</bundles_post_ra>
